<compile_context>
chip_gen: v5e
topology: v5e:2x2
jax: 0.10.0
libtpu: 0.0.40
codegen_flags: <defaults>
</compile_context>

<pallas_src>
import functools

import jax
import jax.numpy as jnp
from jax import lax
from jax.experimental import pallas as pl
from jax.experimental.pallas import tpu as pltpu


def _round_up(x, m):
    return (x + m - 1) // m * m


# ----------------------------------------------------------------------------
# Small-batch path: single invocation, everything resident in VMEM.
# ----------------------------------------------------------------------------
def _triplet_kernel_small(x_ref, sq_row_ref, t_col_ref, t_row_ref, loss_ref,
                          *, margin, n):
    xr = x_ref[...]                                   # keep input dtype for MXU
    xf = xr.astype(jnp.float32)
    sq_col = jnp.sum(xf * xf, axis=1, keepdims=True)  # (n, 1) f32

    # Gram matrix x @ x.T on the MXU, f32 accumulation, no explicit transpose.
    gram = lax.dot_general(
        xr, xr,
        dimension_numbers=(((1,), (1,)), ((), ())),
        preferred_element_type=jnp.float32,
    )                                                 # (n, n) f32

    # Clamped squared pairwise distances (monotone in dist, so we can mine on
    # dist2 and take sqrt only on the mined values).
    dist2 = jnp.maximum(sq_col + sq_row_ref[...] - 2.0 * gram,
                        jnp.float32(1e-12))

    mask = t_col_ref[...] == t_row_ref[...]           # (n, n) same-label mask

    ap2 = jnp.max(jnp.where(mask, dist2, -jnp.inf), axis=1, keepdims=True)
    an2 = jnp.min(jnp.where(mask, jnp.inf, dist2), axis=1, keepdims=True)
    dist_ap = jnp.sqrt(ap2)                           # diagonal => ap2 >= 1e-12
    dist_an = jnp.sqrt(an2)                           # +inf if no negative -> hinge 0

    hinge = jnp.maximum(dist_ap - dist_an + jnp.float32(margin), 0.0)
    loss_ref[0, 0] = jnp.sum(hinge) / jnp.float32(n)


def _triplet_loss_small(inputs, targets, margin):
    n, d = inputs.shape
    t = targets.astype(jnp.int32)
    sq_row = jnp.sum(inputs.astype(jnp.float32) ** 2, axis=1).reshape(1, n)

    kernel = functools.partial(_triplet_kernel_small, margin=float(margin), n=n)
    out = pl.pallas_call(
        kernel,
        out_shape=jax.ShapeDtypeStruct((1, 1), jnp.float32),
        in_specs=[
            pl.BlockSpec(memory_space=pltpu.MemorySpace.VMEM),  # x        (n, d)
            pl.BlockSpec(memory_space=pltpu.MemorySpace.VMEM),  # ||x||^2  (1, n)
            pl.BlockSpec(memory_space=pltpu.MemorySpace.VMEM),  # labels   (n, 1)
            pl.BlockSpec(memory_space=pltpu.MemorySpace.VMEM),  # labels   (1, n)
        ],
        out_specs=pl.BlockSpec(memory_space=pltpu.MemorySpace.SMEM),
    )(inputs, sq_row, t.reshape(n, 1), t.reshape(1, n))
    return out[0, 0]


# ----------------------------------------------------------------------------
# Tiled path: grid over anchor-row blocks; per-row hinge emitted, reduced in
# the wrapper so the grid axis stays "parallel" (shards across v7x's 2 TCs).
# ----------------------------------------------------------------------------
def _triplet_kernel_tiled(x_blk_ref, x_all_ref, sq_row_ref, t_col_ref,
                          t_row_ref, hinge_ref, *, margin, n_valid):
    xb = x_blk_ref[...]                               # (TM, d_pad), input dtype
    xa = x_all_ref[...]                               # (n_pad, d_pad)
    xbf = xb.astype(jnp.float32)
    sq_col = jnp.sum(xbf * xbf, axis=1, keepdims=True)  # (TM, 1)

    gram = lax.dot_general(                           # (TM, n_pad) on the MXU
        xb, xa,
        dimension_numbers=(((1,), (1,)), ((), ())),
        preferred_element_type=jnp.float32,
    )
    dist2 = jnp.maximum(sq_col + sq_row_ref[...] - 2.0 * gram,
                        jnp.float32(1e-12))

    # Padded columns (batch padding) must never win a reduction.
    col_valid = lax.broadcasted_iota(jnp.int32, dist2.shape, 1) < n_valid
    same = t_col_ref[...] == t_row_ref[...]           # (TM, n_pad)

    ap2 = jnp.max(jnp.where(same & col_valid, dist2, -jnp.inf),
                  axis=1, keepdims=True)
    an2 = jnp.min(jnp.where((~same) & col_valid, dist2, jnp.inf),
                  axis=1, keepdims=True)

    # max(.,0) guards padded anchor rows (ap2 = -inf) against NaN; their hinge
    # is discarded by the wrapper anyway.
    dist_ap = jnp.sqrt(jnp.maximum(ap2, 0.0))
    dist_an = jnp.sqrt(an2)
    hinge_ref[...] = jnp.maximum(dist_ap - dist_an + jnp.float32(margin), 0.0)


def _choose_block_rows(n_pad, d_pad, itemsize):
    # Keep live VMEM (~resident x + double-buffered row block + a few (TM, n)
    # f32 temporaries) well under v7x's 64 MiB physical / 32 MiB default scope.
    budget = 28 * 1024 * 1024
    for tm in (512, 256, 128):
        live = (2 * tm * d_pad * itemsize          # double-buffered row block
                + 2 * n_pad * d_pad * itemsize     # resident full x
                + 3 * tm * n_pad * 4               # dist2 + masked temporaries
                + 6 * n_pad * 4)
        if live <= budget:
            return tm
    # TODO(synk): for very large n, add a column/reduction grid axis instead of
    # keeping the full x resident.
    return 128


def _triplet_loss_tiled(inputs, targets, margin, block_rows=None):
    n, d = inputs.shape
    itemsize = jnp.dtype(inputs.dtype).itemsize
    d_pad = _round_up(d, 128)                         # contraction-dim padding for the MXU
    if block_rows is None:
        block_rows = _choose_block_rows(_round_up(n, 128), d_pad, itemsize)
    tm = block_rows
    n_pad = _round_up(n, tm)
    n_blocks = n_pad // tm

    x = inputs
    if d_pad != d or n_pad != n:
        x = jnp.pad(x, ((0, n_pad - n), (0, d_pad - d)))
    t = targets.astype(jnp.int32)
    if n_pad != n:
        t = jnp.pad(t, (0, n_pad - n), constant_values=-1)

    sq_row = jnp.sum(x.astype(jnp.float32) ** 2, axis=1).reshape(1, n_pad)
    t_col = t.reshape(n_pad, 1)
    t_row = t.reshape(1, n_pad)

    kernel = functools.partial(_triplet_kernel_tiled,
                               margin=float(margin), n_valid=n)
    hinge = pl.pallas_call(
        kernel,
        out_shape=jax.ShapeDtypeStruct((n_pad, 1), jnp.float32),
        grid_spec=pltpu.PrefetchScalarGridSpec(
            num_scalar_prefetch=0,
            grid=(n_blocks,),
            in_specs=[
                pl.BlockSpec((tm, d_pad), lambda i: (i, 0)),     # anchor row block
                pl.BlockSpec((n_pad, d_pad), lambda i: (0, 0)),  # full x (resident)
                pl.BlockSpec((1, n_pad), lambda i: (0, 0)),      # ||x||^2 row
                pl.BlockSpec((tm, 1), lambda i: (i, 0)),         # labels (block col)
                pl.BlockSpec((1, n_pad), lambda i: (0, 0)),      # labels (row)
            ],
            out_specs=pl.BlockSpec((tm, 1), lambda i: (i, 0)),
        ),
        compiler_params=pltpu.CompilerParams(
            dimension_semantics=("parallel",),       # shard row blocks across TCs
            vmem_limit_bytes=48 * 1024 * 1024,       # explicit, fits v7x 64 MiB
        ),
    )(x, x, sq_row, t_col, t_row)

    return jnp.sum(hinge[:n, 0]) / jnp.float32(n)


# ----------------------------------------------------------------------------
# Public wrapper: dispatch on batch size.
# ----------------------------------------------------------------------------
def triplet_loss(inputs, targets, margin=0.3, *, block_rows=None):
    """inputs: (n, d) float features; targets: (n,) integer labels."""
    n = inputs.shape[0]
    if block_rows is None and n < 512:
        # Tiny batches are launch/DMA-latency bound; keep a single invocation.
        return _triplet_loss_small(inputs, targets, margin)
    return _triplet_loss_tiled(inputs, targets, margin, block_rows=block_rows)


# ----------------------------------------------------------------------------
# Pure-JAX reference mirroring the PyTorch module.
# ----------------------------------------------------------------------------
def _reference_triplet_loss(inputs, targets, margin=0.3):
    x = inputs.astype(jnp.float32)
    sq = jnp.sum(x * x, axis=1, keepdims=True)
    gram = lax.dot_general(
        x, x, dimension_numbers=(((1,), (1,)), ((), ())),
        precision=lax.Precision.HIGHEST,
        preferred_element_type=jnp.float32,
    )
    dist2 = jnp.maximum(sq + sq.T - 2.0 * gram, 1e-12)
    dist = jnp.sqrt(dist2)
    mask = targets[:, None] == targets[None, :]
    dist_ap = jnp.max(jnp.where(mask, dist, -jnp.inf), axis=1)
    dist_an = jnp.min(jnp.where(mask, jnp.inf, dist), axis=1)
    return jnp.mean(jnp.maximum(dist_ap - dist_an + margin, 0.0))


if __name__ == "__main__":
    key = jax.random.PRNGKey(0)
    k1, k2 = jax.random.split(key)

    # Test 1: small batch -> single-invocation path (matches the module's
    # typical use: batch of identity features).
    n1, d1 = 8, 32
    x1 = jax.random.normal(k1, (n1, d1), dtype=jnp.float32)
    t1 = jnp.array([0, 0, 1, 1, 2, 2, 3, 3], dtype=jnp.int32)  # 4 ids x 2
    loss1 = triplet_loss(x1, t1, margin=0.3)
    jax.block_until_ready(loss1)
    ref1 = _reference_triplet_loss(x1, t1, margin=0.3)
    assert jnp.allclose(loss1, ref1, atol=1e-4, rtol=1e-4), (loss1, ref1)

    # Test 2: exercise the row-tiled path (ragged batch, padded feature dim).
    n2, d2 = 42, 40
    x2 = jax.random.normal(k2, (n2, d2), dtype=jnp.float32)
    t2 = jnp.arange(n2, dtype=jnp.int32) // 3                  # 3 samples / id
    loss2 = triplet_loss(x2, t2, margin=0.3, block_rows=16)
    jax.block_until_ready(loss2)
    ref2 = _reference_triplet_loss(x2, t2, margin=0.3)
    assert jnp.allclose(loss2, ref2, atol=1e-4, rtol=1e-4), (loss2, ref2)

    print("KERNEL_OK")
</pallas_src>

<mosaic_0001>
module attributes {stable_mosaic.version = 11 : i64} {
  func.func @_triplet_kernel_small(%arg0: memref<8x32xf32, #tpu.memory_space<vmem>>, %arg1: memref<1x8xf32, #tpu.memory_space<vmem>>, %arg2: memref<8x1xi32, #tpu.memory_space<vmem>>, %arg3: memref<1x8xi32, #tpu.memory_space<vmem>>, %arg4: memref<1x1xf32, #tpu.memory_space<smem>>) attributes {dimension_semantics = [], scalar_prefetch = 0 : i64, scratch_operands = 0 : i64, tpu.core_type = #tpu.core_type<tc>} {
    %c0 = arith.constant 0 : index
    %c0_0 = arith.constant 0 : index
    %0 = vector.load %arg0[%c0, %c0_0] : memref<8x32xf32, #tpu.memory_space<vmem>>, vector<8x32xf32>
    %1 = arith.mulf %0, %0 : vector<8x32xf32>
    %cst = arith.constant dense<0.000000e+00> : vector<8xf32>
    %2 = vector.multi_reduction <add>, %1, %cst [1] : vector<8x32xf32> to vector<8xf32>
    %3 = vector.shape_cast %2 : vector<8xf32> to vector<8x1xf32>
    %cst_1 = arith.constant dense<0.000000e+00> : vector<8x8xf32>
    %4 = tpu.matmul %0, %0, %cst_1 {dimension_numbers = #tpu.dot_dimension_numbers<[1], [1], [0], [0], [0, 0, 1, 0], [], []>} : vector<8x32xf32>, vector<8x32xf32>, vector<8x8xf32> -> vector<8x8xf32>
    %c0_2 = arith.constant 0 : index
    %c0_3 = arith.constant 0 : index
    %5 = vector.load %arg1[%c0_2, %c0_3] : memref<1x8xf32, #tpu.memory_space<vmem>>, vector<1x8xf32>
    %6 = vector.broadcast %3 : vector<8x1xf32> to vector<8x8xf32>
    %7 = vector.broadcast %5 : vector<1x8xf32> to vector<8x8xf32>
    %8 = arith.addf %6, %7 : vector<8x8xf32>
    %cst_4 = arith.constant 2.000000e+00 : f32
    %9 = vector.broadcast %cst_4 : f32 to vector<8x8xf32>
    %10 = arith.mulf %9, %4 : vector<8x8xf32>
    %11 = arith.subf %8, %10 : vector<8x8xf32>
    %cst_5 = arith.constant 9.99999996E-13 : f32
    %12 = vector.broadcast %cst_5 : f32 to vector<8x8xf32>
    %13 = arith.maximumf %11, %12 : vector<8x8xf32>
    %c0_6 = arith.constant 0 : index
    %c0_7 = arith.constant 0 : index
    %14 = vector.load %arg2[%c0_6, %c0_7] : memref<8x1xi32, #tpu.memory_space<vmem>>, vector<8x1xi32>
    %c0_8 = arith.constant 0 : index
    %c0_9 = arith.constant 0 : index
    %15 = vector.load %arg3[%c0_8, %c0_9] : memref<1x8xi32, #tpu.memory_space<vmem>>, vector<1x8xi32>
    %16 = vector.broadcast %14 : vector<8x1xi32> to vector<8x8xi32>
    %17 = vector.broadcast %15 : vector<1x8xi32> to vector<8x8xi32>
    %18 = arith.cmpi eq, %16, %17 : vector<8x8xi32>
    %cst_10 = arith.constant 0xFF800000 : f32
    %19 = vector.broadcast %cst_10 : f32 to vector<8x8xf32>
    %20 = arith.select %18, %13, %19 : vector<8x8xi1>, vector<8x8xf32>
    %cst_11 = arith.constant dense<0xFF800000> : vector<8xf32>
    %21 = vector.multi_reduction <maximumf>, %20, %cst_11 [1] : vector<8x8xf32> to vector<8xf32>
    %22 = vector.shape_cast %21 : vector<8xf32> to vector<8x1xf32>
    %cst_12 = arith.constant 0x7F800000 : f32
    %23 = vector.broadcast %cst_12 : f32 to vector<8x8xf32>
    %24 = arith.select %18, %23, %13 : vector<8x8xi1>, vector<8x8xf32>
    %cst_13 = arith.constant dense<0x7F800000> : vector<8xf32>
    %25 = vector.multi_reduction <minimumf>, %24, %cst_13 [1] : vector<8x8xf32> to vector<8xf32>
    %26 = vector.shape_cast %25 : vector<8xf32> to vector<8x1xf32>
    %27 = math.sqrt %22 : vector<8x1xf32>
    %28 = math.sqrt %26 : vector<8x1xf32>
    %29 = arith.subf %27, %28 : vector<8x1xf32>
    %cst_14 = arith.constant 3.000000e-01 : f32
    %30 = vector.broadcast %cst_14 : f32 to vector<8x1xf32>
    %31 = arith.addf %29, %30 : vector<8x1xf32>
    %cst_15 = arith.constant 0.000000e+00 : f32
    %32 = vector.broadcast %cst_15 : f32 to vector<8x1xf32>
    %33 = arith.maximumf %31, %32 : vector<8x1xf32>
    %34 = vector.shape_cast %33 : vector<8x1xf32> to vector<1x8x1xf32>
    %cst_16 = arith.constant dense<0.000000e+00> : vector<1xf32>
    %35 = vector.multi_reduction <add>, %34, %cst_16 [1, 2] : vector<1x8x1xf32> to vector<1xf32>
    %36 = vector.shape_cast %35 : vector<1xf32> to vector<1x1x1xf32>
    %37 = vector.extract %36[0, 0, 0] : f32 from vector<1x1x1xf32>
    %cst_17 = arith.constant 8.000000e+00 : f32
    %38 = arith.divf %37, %cst_17 : f32
    %c0_18 = arith.constant 0 : index
    %c0_19 = arith.constant 0 : index
    %39 = memref.load %arg4[%c0_18, %c0_19] : memref<1x1xf32, #tpu.memory_space<smem>>
    memref.store %38, %arg4[%c0_18, %c0_19] : memref<1x1xf32, #tpu.memory_space<smem>>
    return
  }
}

</mosaic_0001>

<bundles_post_ra>
// kernel: tpu_custom_call.1
= control target key start
LH: loop header
LB: loop body
LE: loop exit
PB: predicated region body
PF: predicated region fallthrough
CT: control target
= control target key end

     0   :  { %vm20_vm0 = vcmask 261120   ;;  %v167_v2 = vmov 0   ;;  %s210_s0 = inlined_call_operand.vmem [shape: f32[8,32], index: 0, kind: input, shape index: {}]   ;;  %s211_s1 = inlined_call_operand.vmem [shape: f32[1,8], index: 1, kind: input, shape index: {}]   ;;  %s212_s2 = inlined_call_operand.vmem [shape: s32[8,1], index: 2, kind: input, shape index: {}]   ;;  %s213_s3 = inlined_call_operand.vmem [shape: s32[1,8], index: 3, kind: input, shape index: {}]   ;;  %s214_s4 = inlined_call_operand.hbm [shape: f32[1,1], index: 4, kind: output, shape index: {}]  }
   0x1   :  { %v18_v0 = vld [vmem:[%s210_s0] sm:$0xff]  ;;  %144 = vset.pattern.permute.xlu0 %v167_v2 }
   0x2   :  { %135 = vmatpush.xpose.msk.msra.mxu0 %vm20_vm0, %v18_v0  ;;  %v19_v1 = vmul.f32 %v18_v0, %v18_v0 }
   0x3   :  { %9 = vsyncpa [#allocation3], 0  ;;  %v55_v4 = vld [vmem:[%s212_s2] sm:$0xff]  ;;  %vm63_vm1 = vcmask 64512   ;;  %vm98_vm7 = vcmask 7168   ;;  %v168_v44 = vmov 8.0  }
   0x4   :  { %v21_v3 = vsel %vm20_vm0, %v19_v1, 0.0  ;;  %v145_v5 = vld [vmem:[%s211_s1] ss:$0 sm:$0xff]  ;;  %s169_s25 = smov [#allocation2]  }
   0x5   :  { %136 = vmatmul.msk.f32.vlgmr.msra.gmra.mxu0 %vm20_vm0, %v18_v0  ;;  %22 = vadd.xlane.f32.xlu0 %v21_v3  ;;  %v146_v11 = vld [vmem:[%s213_s3] ss:$0 sm:$0xff]  ;;  %s125_s3 = sshll.u32 %s214_s4, 4  ;;  %s126_s3 = int_to_ptr.hbm [resolvable:$true] %s125_s3 }
  0x19   :  { %58 = vperm.xlu0 %144, %v55_v4  }
  0x78   :  { %v23_v6 = vpop.xlane.xlu0 %22 }
  0x79   :  { %v51_v9 = vadd.f32 %v145_v5, %v23_v6 }
  0x82   :  { %v44_v7 = vpop.f32.mrf.mxu0 }
  0x83   :  { %v52_v8 = vmul.f32 2.0, %v44_v7 }
  0x85   :  { %v53_v10 = vsub.f32 %v51_v9, %v52_v8 }
  0x87   :  { %v54_v12 = vmax.f32 %v53_v10, 1e-12 }
  0x8b   :  { %v59_v13 = vpop.permute.xlu0 %58 }
  0x8c   :  { %vm61_vm2 = vcmp.eq.s32.totalorder %v59_v13, %v146_v11 }
  0x8d   :  { %v62_v14 = vsel %vm61_vm2, %v54_v12, -inf  ;;  %v67_v16 = vsel %vm61_vm2, inf, %v54_v12 }
  0x8e   :  { %v64_v15 = vsel %vm63_vm1, %v62_v14, -inf  ;;  %v68_v17 = vsel %vm63_vm1, %v67_v16, inf }
  0x8f   :  { %65 = vmax.xlane.f32.xlu1 %v64_v15 }
  0x97   :  { %69 = vmin.xlane.f32.xlu1 %v68_v17 }
 0x102   :  { %v66_v18 = vpop.xlane.xlu1 %65 }
 0x103   :  { %147 = vrsqrt.f32 %v66_v18  ;;  %vm78_vm3 = vcmp.eq.f32.partialorder %v66_v18, inf  ;;  %v81_v35 = vand.u32 2147483648, %v66_v18  ;;  %vm80_vm5 = vcmp.eq.f32.partialorder %v66_v18, 0.0 }
 0x109   :  { %v148_v19 = vpop.eup %147 }
 0x10a   :  { %v72_v20 = vmul.f32 %v148_v19, %v66_v18  ;;  %v70_v21 = vpop.xlane.xlu1 %69 }
 0x10b   :  { %149 = vrsqrt.f32 %v70_v21  ;;  %vm90_vm4 = vcmp.eq.f32.partialorder %v70_v21, inf  ;;  %v93_v36 = vand.u32 2147483648, %v70_v21  ;;  %vm92_vm6 = vcmp.eq.f32.partialorder %v70_v21, 0.0 }
 0x10c   :  { %v73_v22 = vmul.f32 %v148_v19, %v72_v20  ;;  %151 = vrcp.f32 %v168_v44 }
 0x10e   :  { %v74_v23 = vmul.f32 0.5, %v73_v22 }
 0x110   :  { %v75_v24 = vsub.f32 1.5, %v74_v23 }
 0x111   :  { %v150_v25 = vpop.eup %149 }
 0x112   :  { %v84_v26 = vmul.f32 %v150_v25, %v70_v21  ;;  %v76_v28 = vmul.f32 %v148_v19, %v75_v24  ;;  %v152_v45 = vpop.eup %151 }
 0x113   :  { %v110_v46 = vmul.f32 8.0, %v152_v45  ;;  %vm114_vm8 = vweird.f32 %v152_v45 }
 0x114   :  { %v85_v27 = vmul.f32 %v150_v25, %v84_v26  ;;  %v77_v30 = vmul.f32 %v76_v28, %v66_v18 }
 0x115   :  { %v111_v47 = vsub.f32 1.0, %v110_v46 }
 0x116   :  { %v86_v29 = vmul.f32 0.5, %v85_v27  ;;  %v79_v33 = vsel %vm78_vm3, %v66_v18, %v77_v30 }
 0x117   :  { %v82_v38 = vsel %vm80_vm5, %v81_v35, %v79_v33  ;;  %v112_v51 = vmul.f32 %v152_v45, %v111_v47 }
 0x118   :  { %v87_v31 = vsub.f32 1.5, %v86_v29 }
 0x119   :  { %v113_v54 = vadd.f32 %v152_v45, %v112_v51 }
 0x11a   :  { %v88_v32 = vmul.f32 %v150_v25, %v87_v31 }
 0x11b   :  { %v115_v57 = vsel %vm114_vm8, %v152_v45, %v113_v54 }
 0x11c   :  { %v89_v34 = vmul.f32 %v88_v32, %v70_v21 }
 0x11e   :  { %v91_v37 = vsel %vm90_vm4, %v70_v21, %v89_v34 }
 0x11f   :  { %v94_v39 = vsel %vm92_vm6, %v93_v36, %v91_v37 }
 0x120   :  { %v95_v40 = vsub.f32 %v82_v38, %v94_v39 }
 0x122   :  { %v96_v41 = vadd.f32 0.3, %v95_v40 }
 0x124   :  { %v97_v42 = vmax.f32 %v96_v41, 0.0 }
 0x126   :  { %v99_v43 = vsel %vm98_vm7, %v97_v42, 0.0 }
 0x127   :  { %100 = vadd.xlane.f32.xlu2 %v99_v43 }
 0x19a   :  { %v101_v48 = vpop.xlane.xlu2 %100 }
 0x19b   :  { %v102_v49 = vrot.slane %v101_v48, 4 }
 0x19d   :  { %v103_v50 = vadd.f32 %v102_v49, %v101_v48 }
 0x19f   :  { %v104_v52 = vrot.slane %v103_v50, 2 }
 0x1a1   :  { %v105_v53 = vadd.f32 %v104_v52, %v103_v50 }
 0x1a3   :  { %v106_v55 = vrot.slane %v105_v53, 1 }
 0x1a5   :  { %v107_v56 = vadd.f32 %v106_v55, %v105_v53 }
 0x1a7   :  { %137 = vpush %v107_v56 }
 0x1a8   :  { %139 = vpush %v115_v57 }
 0x1d8   :  { %s138_s22 = spop %137 }
 0x1d9   :  { %s140_s23 = spop %139 }
 0x1da   :  { %s117_s24 = smul.f32 %s140_s23, %s138_s22 }
 0x1dc   :  { %119 = sst [smem:[#allocation2]] %s117_s24 }
 0x1dd   :  { %128 = dma.smem_to_hbm %s169_s25, 16, %s126_s3, [#allocation3]  }
 0x1de   :  { %165 = dma.done.wait [#allocation3], 16  }
 0x1df   :  { %166 = vsyncadd [#allocation3], 4294967280 }
 0x1e0   :  { %133 = sfence }
 0x1e1   :  { %134 = vsyncpa [#allocation3], 1 }

</bundles_post_ra>
